<compile_context>
chip_gen: v6e
topology: v6e:2x2x1
jax: 0.10.0
libtpu: 0.0.40
codegen_flags: <defaults>
</compile_context>

<pallas_src>
import functools

import jax
import jax.numpy as jnp
from jax import lax
from jax.experimental import pallas as pl
from jax.experimental.pallas import tpu as pltpu

_LANES = 128


def _dice_sums_kernel(pred_ref, tgt_ref, out_ref, i_acc, z_acc, y_acc,
                      *, hw, rows_per_tile):
    """Accumulates per-image, per-class (intersect, z_sum, y_sum)."""
    i = pl.program_id(1)                       # row-tile index within the image

    @pl.when(i == 0)
    def _():
        i_acc[...] = jnp.zeros_like(i_acc)
        z_acc[...] = jnp.zeros_like(z_acc)
        y_acc[...] = jnp.zeros_like(y_acc)

    p = pred_ref[...]                          # (C, S, 128) f32 logits
    t = tgt_ref[...]                           # (1, S, 128) i32 labels
    C, S, L = p.shape

    # Softmax over the channel axis: leading (non-tiled) axis -> pure VPU work
    # across vregs, no cross-sublane XLU reductions.
    m = jnp.max(p, axis=0, keepdims=True)                  # (1, S, 128)
    e = jnp.exp(p - m)                                     # (C, S, 128)  EUP
    denom = jnp.sum(e, axis=0, keepdims=True)              # (1, S, 128)
    # One reciprocal per pixel + broadcast multiply (approx=True would ride the
    # idle EUP slot, but exact keeps strict parity with the reference softmax).
    s = e * pl.reciprocal(denom, approx=False)             # (C, S, 128)

    # Valid-pixel mask: handles both the ragged last tile and any lane padding.
    row = lax.broadcasted_iota(jnp.int32, (1, S, L), 1)
    lane = lax.broadcasted_iota(jnp.int32, (1, S, L), 2)
    pix = (i * rows_per_tile + row) * L + lane
    valid = pix < hw                                       # (1, S, 128)

    # One-hot target per class via leading-axis iota compare.
    cls = lax.broadcasted_iota(jnp.int32, (C, S, L), 0)
    onehot = jnp.where((t == cls) & valid, 1.0, 0.0)       # (C, S, 128)
    sv = jnp.where(valid, s, 0.0)

    # Per-lane partial sums (sublane reduce only); lane reduce deferred.
    i_acc[...] += jnp.sum(sv * onehot, axis=1)             # (C, 128)
    z_acc[...] += jnp.sum(sv * sv, axis=1)
    y_acc[...] += jnp.sum(onehot, axis=1)

    @pl.when(i == pl.num_programs(1) - 1)
    def _():
        out_ref[:, 0:1] = jnp.sum(i_acc[...], axis=1, keepdims=True)
        out_ref[:, 1:2] = jnp.sum(z_acc[...], axis=1, keepdims=True)
        out_ref[:, 2:3] = jnp.sum(y_acc[...], axis=1, keepdims=True)


def _rows_per_tile(num_classes, num_rows, vmem_budget_bytes):
    """Largest multiple-of-8 row count whose double-buffered blocks fit VMEM."""
    # Double-buffered pred + target blocks: 2 * (C + 1) * S * 128 * 4 bytes.
    bytes_per_row = 2 * (num_classes + 1) * _LANES * 4
    cap = max(8, (vmem_budget_bytes // bytes_per_row) // 8 * 8)
    return num_rows if num_rows <= cap else cap


def custom_dice_loss(pred, target, *, loss_weight=1.0,
                     vmem_budget_bytes=8 * 1024 * 1024):
    """pred: (N, C, H, W) logits; target: (N, H, W) int class labels."""
    N, C, H, W = pred.shape
    HW = H * W

    pred3 = pred.reshape(N, C, HW).astype(jnp.float32)   # free, contiguous
    tgt3 = target.reshape(N, 1, HW).astype(jnp.int32)

    # Typical segmentation shapes have HW % 128 == 0 (no copy). Otherwise pad
    # only the small lane tail; padded pixels are masked in-kernel.
    R = pl.cdiv(HW, _LANES)
    HW_pad = R * _LANES
    if HW_pad != HW:
        pred3 = jnp.pad(pred3, ((0, 0), (0, 0), (0, HW_pad - HW)))
        tgt3 = jnp.pad(tgt3, ((0, 0), (0, 0), (0, HW_pad - HW)),
                       constant_values=-1)

    pred4 = pred3.reshape(N, C, R, _LANES)               # (N, C, R, 128)
    tgt4 = tgt3.reshape(N, 1, R, _LANES)                 # (N, 1, R, 128)

    S = _rows_per_tile(C, R, vmem_budget_bytes)
    num_tiles = pl.cdiv(R, S)

    kernel = functools.partial(_dice_sums_kernel, hw=HW, rows_per_tile=S)

    sums = pl.pallas_call(
        kernel,
        out_shape=jax.ShapeDtypeStruct((N, C, 3), jnp.float32),
        grid_spec=pltpu.PrefetchScalarGridSpec(
            num_scalar_prefetch=0,
            grid=(N, num_tiles),
            in_specs=[
                pl.BlockSpec((None, C, S, _LANES), lambda n, i: (n, 0, i, 0)),
                pl.BlockSpec((None, 1, S, _LANES), lambda n, i: (n, 0, i, 0)),
            ],
            out_specs=pl.BlockSpec((None, C, 3), lambda n, i: (n, 0, 0)),
            scratch_shapes=[pltpu.VMEM((C, _LANES), jnp.float32)] * 3,
        ),
        compiler_params=pltpu.CompilerParams(
            dimension_semantics=("parallel", "arbitrary")),
    )(pred4, tgt4)

    totals = jnp.sum(sums, axis=0)                        # (C, 3)
    intersect, z_sum, y_sum = totals[:, 0], totals[:, 1], totals[:, 2]
    smooth = 1e-5
    dice = (2.0 * intersect + smooth) / (z_sum + y_sum + smooth)
    return jnp.mean(1.0 - dice) * loss_weight


def _reference_loss(pred, target, loss_weight=1.0):
    """Plain-JAX reference mirroring the PyTorch forward."""
    C = pred.shape[1]
    soft = jax.nn.softmax(pred.astype(jnp.float32), axis=1)
    smooth = 1e-5
    total = 0.0
    for c in range(C):
        s = soft[:, c]
        t = (target == c).astype(jnp.float32)
        inter = jnp.sum(s * t)
        y = jnp.sum(t * t)
        z = jnp.sum(s * s)
        total += 1.0 - (2.0 * inter + smooth) / (z + y + smooth)
    return total / C * loss_weight


if __name__ == "__main__":
    key = jax.random.PRNGKey(0)
    k1, k2 = jax.random.split(key)

    N, C, H, W = 2, 4, 16, 16
    pred = jax.random.normal(k1, (N, C, H, W), dtype=jnp.float32)
    target = jax.random.randint(k2, (N, H, W), minval=0, maxval=C,
                                dtype=jnp.int32)
    # Sprinkle in some ignore_index pixels (they match no class, as in torch).
    target = target.at[0, 0, :4].set(-100)

    loss = custom_dice_loss(pred, target, loss_weight=1.0)
    loss = jax.block_until_ready(loss)

    ref = _reference_loss(pred, target, loss_weight=1.0)
    assert jnp.allclose(loss, ref, atol=1e-5, rtol=1e-5), (loss, ref)

    print("KERNEL_OK")
</pallas_src>

<mosaic_0001>
module attributes {stable_mosaic.version = 11 : i64} {
  func.func @_dice_sums_kernel(%arg0: i32, %arg1: i32, %arg2: memref<1x4x2x128xf32, #tpu.memory_space<vmem>>, %arg3: memref<1x1x2x128xi32, #tpu.memory_space<vmem>>, %arg4: memref<1x4x3xf32, #tpu.memory_space<vmem>>, %arg5: memref<4x128xf32, #tpu.memory_space<vmem>>, %arg6: memref<4x128xf32, #tpu.memory_space<vmem>>, %arg7: memref<4x128xf32, #tpu.memory_space<vmem>>) attributes {dimension_semantics = [#tpu.dimension_semantics<parallel>, #tpu.dimension_semantics<arbitrary>], iteration_bounds = array<i64: 2, 1>, scalar_prefetch = 0 : i64, scratch_operands = 3 : i64, tpu.core_type = #tpu.core_type<tc>, window_params = [{transform_indices = @transform_0, window_bounds = array<i64: 1, 4, 2, 128>}, {transform_indices = @transform_1, window_bounds = array<i64: 1, 1, 2, 128>}, {transform_indices = @transform_2, window_bounds = array<i64: 1, 4, 3>}]} {
    %c0_i32 = arith.constant 0 : i32
    %0 = arith.cmpi eq, %arg1, %c0_i32 : i32
    %1 = arith.extui %0 : i1 to i32
    %c0_i32_0 = arith.constant 0 : i32
    %2 = arith.cmpi ne, %1, %c0_i32_0 : i32
    scf.if %2 {
      %cst_29 = arith.constant 0.000000e+00 : f32
      %56 = vector.broadcast %cst_29 : f32 to vector<4x128xf32>
      %c0_30 = arith.constant 0 : index
      %c0_31 = arith.constant 0 : index
      %57 = vector.load %arg5[%c0_30, %c0_31] : memref<4x128xf32, #tpu.memory_space<vmem>>, vector<4x128xf32>
      tpu.vector_store %arg5[%c0_30, %c0_31], %56 {strides = array<i32>} : memref<4x128xf32, #tpu.memory_space<vmem>>, vector<4x128xf32>,
      %cst_32 = arith.constant 0.000000e+00 : f32
      %58 = vector.broadcast %cst_32 : f32 to vector<4x128xf32>
      %c0_33 = arith.constant 0 : index
      %c0_34 = arith.constant 0 : index
      %59 = vector.load %arg6[%c0_33, %c0_34] : memref<4x128xf32, #tpu.memory_space<vmem>>, vector<4x128xf32>
      tpu.vector_store %arg6[%c0_33, %c0_34], %58 {strides = array<i32>} : memref<4x128xf32, #tpu.memory_space<vmem>>, vector<4x128xf32>,
      %cst_35 = arith.constant 0.000000e+00 : f32
      %60 = vector.broadcast %cst_35 : f32 to vector<4x128xf32>
      %c0_36 = arith.constant 0 : index
      %c0_37 = arith.constant 0 : index
      %61 = vector.load %arg7[%c0_36, %c0_37] : memref<4x128xf32, #tpu.memory_space<vmem>>, vector<4x128xf32>
      tpu.vector_store %arg7[%c0_36, %c0_37], %60 {strides = array<i32>} : memref<4x128xf32, #tpu.memory_space<vmem>>, vector<4x128xf32>,
    } else {
    }
    %c0 = arith.constant 0 : index
    %c0_1 = arith.constant 0 : index
    %c0_2 = arith.constant 0 : index
    %c0_3 = arith.constant 0 : index
    %3 = vector.load %arg2[%c0, %c0_1, %c0_2, %c0_3] : memref<1x4x2x128xf32, #tpu.memory_space<vmem>>, vector<1x4x2x128xf32>
    %4 = vector.shape_cast %3 : vector<1x4x2x128xf32> to vector<4x2x128xf32>
    %c0_4 = arith.constant 0 : index
    %c0_5 = arith.constant 0 : index
    %c0_6 = arith.constant 0 : index
    %c0_7 = arith.constant 0 : index
    %5 = vector.load %arg3[%c0_4, %c0_5, %c0_6, %c0_7] : memref<1x1x2x128xi32, #tpu.memory_space<vmem>>, vector<1x1x2x128xi32>
    %6 = vector.shape_cast %5 : vector<1x1x2x128xi32> to vector<1x2x128xi32>
    %cst = arith.constant dense<0xFF800000> : vector<2x128xf32>
    %7 = vector.multi_reduction <maximumf>, %4, %cst [0] : vector<4x2x128xf32> to vector<2x128xf32>
    %8 = vector.shape_cast %7 : vector<2x128xf32> to vector<1x2x128xf32>
    %9 = vector.broadcast %8 : vector<1x2x128xf32> to vector<4x2x128xf32>
    %10 = arith.subf %4, %9 : vector<4x2x128xf32>
    %11 = math.exp %10 : vector<4x2x128xf32>
    %cst_8 = arith.constant dense<0.000000e+00> : vector<2x128xf32>
    %12 = vector.multi_reduction <add>, %11, %cst_8 [0] : vector<4x2x128xf32> to vector<2x128xf32>
    %13 = vector.shape_cast %12 : vector<2x128xf32> to vector<1x2x128xf32>
    %14 = tpu.reciprocal %13 : vector<1x2x128xf32> -> vector<1x2x128xf32>
    %15 = vector.broadcast %14 : vector<1x2x128xf32> to vector<4x2x128xf32>
    %16 = arith.mulf %11, %15 : vector<4x2x128xf32>
    %17 = tpu.iota {dimensions = array<i32: 1>} : vector<1x2x128xi32>
    %18 = tpu.iota {dimensions = array<i32: 2>} : vector<1x2x128xi32>
    %c2_i32 = arith.constant 2 : i32
    %19 = arith.muli %arg1, %c2_i32 : i32
    %20 = vector.broadcast %19 : i32 to vector<1x2x128xi32>
    %21 = arith.addi %20, %17 : vector<1x2x128xi32>
    %c128_i32 = arith.constant 128 : i32
    %22 = vector.broadcast %c128_i32 : i32 to vector<1x2x128xi32>
    %23 = arith.muli %21, %22 : vector<1x2x128xi32>
    %24 = arith.addi %23, %18 : vector<1x2x128xi32>
    %c256_i32 = arith.constant 256 : i32
    %25 = vector.broadcast %c256_i32 : i32 to vector<1x2x128xi32>
    %26 = arith.cmpi slt, %24, %25 : vector<1x2x128xi32>
    %27 = tpu.iota {dimensions = array<i32: 0>} : vector<4x2x128xi32>
    %28 = vector.broadcast %6 : vector<1x2x128xi32> to vector<4x2x128xi32>
    %29 = arith.cmpi eq, %28, %27 : vector<4x2x128xi32>
    %30 = vector.broadcast %26 : vector<1x2x128xi1> to vector<4x2x128xi1>
    %31 = arith.andi %29, %30 : vector<4x2x128xi1>
    %cst_9 = arith.constant 1.000000e+00 : f32
    %cst_10 = arith.constant 0.000000e+00 : f32
    %32 = vector.broadcast %cst_9 : f32 to vector<4x2x128xf32>
    %33 = vector.broadcast %cst_10 : f32 to vector<4x2x128xf32>
    %34 = arith.select %31, %32, %33 : vector<4x2x128xi1>, vector<4x2x128xf32>
    %cst_11 = arith.constant 0.000000e+00 : f32
    %35 = vector.shape_cast %26 : vector<1x2x128xi1> to vector<1x2x128xi1>
    %36 = vector.broadcast %35 : vector<1x2x128xi1> to vector<4x2x128xi1>
    %37 = vector.broadcast %cst_11 : f32 to vector<4x2x128xf32>
    %38 = arith.select %36, %16, %37 : vector<4x2x128xi1>, vector<4x2x128xf32>
    %c0_12 = arith.constant 0 : index
    %c0_13 = arith.constant 0 : index
    %39 = vector.load %arg5[%c0_12, %c0_13] : memref<4x128xf32, #tpu.memory_space<vmem>>, vector<4x128xf32>
    %40 = arith.mulf %38, %34 : vector<4x2x128xf32>
    %cst_14 = arith.constant dense<0.000000e+00> : vector<4x128xf32>
    %41 = vector.multi_reduction <add>, %40, %cst_14 [1] : vector<4x2x128xf32> to vector<4x128xf32>
    %42 = arith.addf %39, %41 : vector<4x128xf32>
    %c0_15 = arith.constant 0 : index
    %c0_16 = arith.constant 0 : index
    %43 = vector.load %arg5[%c0_15, %c0_16] : memref<4x128xf32, #tpu.memory_space<vmem>>, vector<4x128xf32>
    tpu.vector_store %arg5[%c0_15, %c0_16], %42 {strides = array<i32>} : memref<4x128xf32, #tpu.memory_space<vmem>>, vector<4x128xf32>,
    %c0_17 = arith.constant 0 : index
    %c0_18 = arith.constant 0 : index
    %44 = vector.load %arg6[%c0_17, %c0_18] : memref<4x128xf32, #tpu.memory_space<vmem>>, vector<4x128xf32>
    %45 = arith.mulf %38, %38 : vector<4x2x128xf32>
    %cst_19 = arith.constant dense<0.000000e+00> : vector<4x128xf32>
    %46 = vector.multi_reduction <add>, %45, %cst_19 [1] : vector<4x2x128xf32> to vector<4x128xf32>
    %47 = arith.addf %44, %46 : vector<4x128xf32>
    %c0_20 = arith.constant 0 : index
    %c0_21 = arith.constant 0 : index
    %48 = vector.load %arg6[%c0_20, %c0_21] : memref<4x128xf32, #tpu.memory_space<vmem>>, vector<4x128xf32>
    tpu.vector_store %arg6[%c0_20, %c0_21], %47 {strides = array<i32>} : memref<4x128xf32, #tpu.memory_space<vmem>>, vector<4x128xf32>,
    %c0_22 = arith.constant 0 : index
    %c0_23 = arith.constant 0 : index
    %49 = vector.load %arg7[%c0_22, %c0_23] : memref<4x128xf32, #tpu.memory_space<vmem>>, vector<4x128xf32>
    %cst_24 = arith.constant dense<0.000000e+00> : vector<4x128xf32>
    %50 = vector.multi_reduction <add>, %34, %cst_24 [1] : vector<4x2x128xf32> to vector<4x128xf32>
    %51 = arith.addf %49, %50 : vector<4x128xf32>
    %c0_25 = arith.constant 0 : index
    %c0_26 = arith.constant 0 : index
    %52 = vector.load %arg7[%c0_25, %c0_26] : memref<4x128xf32, #tpu.memory_space<vmem>>, vector<4x128xf32>
    tpu.vector_store %arg7[%c0_25, %c0_26], %51 {strides = array<i32>} : memref<4x128xf32, #tpu.memory_space<vmem>>, vector<4x128xf32>,
    %c0_i32_27 = arith.constant 0 : i32
    %53 = arith.cmpi eq, %arg1, %c0_i32_27 : i32
    %54 = arith.extui %53 : i1 to i32
    %c0_i32_28 = arith.constant 0 : i32
    %55 = arith.cmpi ne, %54, %c0_i32_28 : i32
    scf.if %55 {
      %c0_29 = arith.constant 0 : index
      %c0_30 = arith.constant 0 : index
      %56 = vector.load %arg5[%c0_29, %c0_30] : memref<4x128xf32, #tpu.memory_space<vmem>>, vector<4x128xf32>
      %cst_31 = arith.constant dense<0.000000e+00> : vector<4xf32>
      %57 = vector.multi_reduction <add>, %56, %cst_31 [1] : vector<4x128xf32> to vector<4xf32>
      %58 = vector.shape_cast %57 : vector<4xf32> to vector<4x1xf32>
      %c0_32 = arith.constant 0 : index
      %c0_33 = arith.constant 0 : index
      %c0_34 = arith.constant 0 : index
      %59 = vector.load %arg4[%c0_32, %c0_33, %c0_34] : memref<1x4x3xf32, #tpu.memory_space<vmem>>, vector<1x4x1xf32>
      %60 = vector.shape_cast %59 : vector<1x4x1xf32> to vector<4x1xf32>
      %61 = vector.shape_cast %58 : vector<4x1xf32> to vector<1x4x1xf32>
      tpu.vector_store %arg4[%c0_32, %c0_33, %c0_34], %61 {strides = array<i32>} : memref<1x4x3xf32, #tpu.memory_space<vmem>>, vector<1x4x1xf32>,
      %c0_35 = arith.constant 0 : index
      %c0_36 = arith.constant 0 : index
      %62 = vector.load %arg6[%c0_35, %c0_36] : memref<4x128xf32, #tpu.memory_space<vmem>>, vector<4x128xf32>
      %cst_37 = arith.constant dense<0.000000e+00> : vector<4xf32>
      %63 = vector.multi_reduction <add>, %62, %cst_37 [1] : vector<4x128xf32> to vector<4xf32>
      %64 = vector.shape_cast %63 : vector<4xf32> to vector<4x1xf32>
      %c0_38 = arith.constant 0 : index
      %c0_39 = arith.constant 0 : index
      %c1 = arith.constant 1 : index
      %65 = vector.load %arg4[%c0_38, %c0_39, %c1] : memref<1x4x3xf32, #tpu.memory_space<vmem>>, vector<1x4x1xf32>
      %66 = vector.shape_cast %65 : vector<1x4x1xf32> to vector<4x1xf32>
      %67 = vector.shape_cast %64 : vector<4x1xf32> to vector<1x4x1xf32>
      tpu.vector_store %arg4[%c0_38, %c0_39, %c1], %67 {strides = array<i32>} : memref<1x4x3xf32, #tpu.memory_space<vmem>>, vector<1x4x1xf32>,
      %c0_40 = arith.constant 0 : index
      %c0_41 = arith.constant 0 : index
      %68 = vector.load %arg7[%c0_40, %c0_41] : memref<4x128xf32, #tpu.memory_space<vmem>>, vector<4x128xf32>
      %cst_42 = arith.constant dense<0.000000e+00> : vector<4xf32>
      %69 = vector.multi_reduction <add>, %68, %cst_42 [1] : vector<4x128xf32> to vector<4xf32>
      %70 = vector.shape_cast %69 : vector<4xf32> to vector<4x1xf32>
      %c0_43 = arith.constant 0 : index
      %c0_44 = arith.constant 0 : index
      %c2 = arith.constant 2 : index
      %71 = vector.load %arg4[%c0_43, %c0_44, %c2] : memref<1x4x3xf32, #tpu.memory_space<vmem>>, vector<1x4x1xf32>
      %72 = vector.shape_cast %71 : vector<1x4x1xf32> to vector<4x1xf32>
      %73 = vector.shape_cast %70 : vector<4x1xf32> to vector<1x4x1xf32>
      tpu.vector_store %arg4[%c0_43, %c0_44, %c2], %73 {strides = array<i32>} : memref<1x4x3xf32, #tpu.memory_space<vmem>>, vector<1x4x1xf32>,
    } else {
    }
    return
  }
  func.func @transform_0(%arg0: i32, %arg1: i32) -> (i32, i32, i32, i32) {
    %c0_i32 = arith.constant 0 : i32
    %c0_i32_0 = arith.constant 0 : i32
    %c0_i32_1 = arith.constant 0 : i32
    return %arg0, %c0_i32, %arg1, %c0_i32_0 : i32, i32, i32, i32
  }
  func.func @transform_1(%arg0: i32, %arg1: i32) -> (i32, i32, i32, i32) {
    %c0_i32 = arith.constant 0 : i32
    %c0_i32_0 = arith.constant 0 : i32
    %c0_i32_1 = arith.constant 0 : i32
    return %arg0, %c0_i32, %arg1, %c0_i32_0 : i32, i32, i32, i32
  }
  func.func @transform_2(%arg0: i32, %arg1: i32) -> (i32, i32, i32) {
    %c0_i32 = arith.constant 0 : i32
    %c0_i32_0 = arith.constant 0 : i32
    %c0_i32_1 = arith.constant 0 : i32
    return %arg0, %c0_i32, %c0_i32_0 : i32, i32, i32
  }
}

</mosaic_0001>

<bundles_post_ra>
// kernel: tpu_custom_call.1
= control target key start
LH: loop header
LB: loop body
LE: loop exit
PB: predicated region body
PF: predicated region fallthrough
CT: control target
= control target key end

     0   :  { %7 = vsyncpa [#allocation6], 0  ;;  %s950_s0 = inlined_call_operand.hbm [shape: f32[2,4,2,128], index: 0, kind: input, shape index: {}]   ;;  %s951_s1 = inlined_call_operand.hbm [shape: s32[2,1,2,128], index: 1, kind: input, shape index: {}]   ;;  %s952_s2 = inlined_call_operand.vmem [shape: f32[2,4,3], index: 2, kind: output, shape index: {}]  }
   0x1   :  { %9 = vsyncpa [#allocation6 + $0x1], 0 }
   0x2   :  { %10 = vsyncpa [#allocation8], 0 }
   0x3   :  { %12 = vsyncpa [#allocation8 + $0x1], 0  ;;  %s759_s9 = smov 0   ;;  %s761_s10 = smov 0  }
   0x4   :  { %s763_s11 = smov 0   ;;  %s765_s12 = smov 0  }
   0x5   :  { %s767_s13 = smov 0   ;;  %s769_s14 = smov 0  }
   0x6 LB: > { %s538_s15 = sadd.s32 4294967295, %s737_s14   ;;  %s30_s16 = sadd.s32 1, %s733_s13  ;;  %s737_s14 = sphi %s769_s14, %s18_s14   ;;  %s733_s13 = sphi %s767_s13, %s961_s13   ;;  %s729_s12 = sphi %s765_s12, %s960_s12   ;;  %s725_s11 = sphi %s763_s11, %s959_s11   ;;  %s721_s10 = sphi %s761_s10, %s958_s10   ;;  %s717_s9 = sphi %s759_s9, %s957_s9  }
   0x7   : > { %p32_p0 = scmp.ge.s32.totalorder %s30_s16, 2  ;;  %s39_s17 = sadd.s32 1, %s725_s11 }
   0x8   : > { %p46_p1 = scmp.ne.s32.totalorder %s725_s11, %s721_s10  ;;  %p47_p2 = scmp.eq.s32.totalorder %s737_s14, 0 }
   0x9   : > { %s963_s16 = smov (%p32_p0, %s30_s16), 0  ;;  %p52_p4 = scmp.ne.s32.totalorder %s721_s10, %s717_s9 }
   0xa   : > { %p795_p3 = por %p47_p2, %p46_p1  ;;  %s34_s19 = ssub.s32 %s733_s13, %s963_s16 }
   0xb   : > { %p53_p5 = scmp.eq.s32.totalorder %s538_s15, 0  ;;  %p37_p6 = scmp.eq.s32.totalorder %s34_s19, 0 }
   0xc   : > { %p565_p8 = scmp.lt.s32.totalorder %s737_s14, 2  ;;  %s811_s22 = sand.u32 1, %s725_s11  }
   0xd   : > { %p802_p7 = por %p53_p5, %p52_p4  ;;  %s553_s23 = sshll.u32 %s733_s13, 7 }
   0xe   : > { %s808_s21 = scalar_select %p37_p6, %s725_s11, %s39_s17  }
   0xf   : > { %s542_s24 = sshll.u32 %s811_s22, 3  ;;  %s141_s27 = scalar_lea.hbm %s950_s0, %s553_s23 }
  0x10   : > { %s134_s28 = scalar_lea.vmem [#allocation5], %s542_s24  ;;  %p820_p9 = pnand %p565_p8, %p795_p3 }
  0x11   : > { %s142_s29 = sshll.u32 %s134_s28, 4  ;;  %s131_s3 = scalar_lea.sflag [#allocation6], %s811_s22  ;;  %s143_s29 = int_to_ptr.vmem [resolvable:$true] %s142_s29 }
  0x12   : > { %p629_p10 = pneg %p820_p9  ;;  %s640_s4 = scalar_lea.vmem %s143_s29, 128 }
  0x13   : > { %p641_p11 = scmp.ne.s32.totalorder %s143_s29, %s640_s4  ;;  %s739_s5 = smov [#allocation5]  }
  0x14   : > { %s645_s6 = sshll.u32 %s739_s5, 4  ;;  %s646_s6 = int_to_ptr.vmem [resolvable:$false] %s645_s6 }
  0x15   : > { %p643_p12 = pnand %p641_p11, %p629_p10  ;;  %s647_s7 = scalar_lea.vmem %s646_s6, 256 }
  0x16   : > { %p648_p0 = scmp.lt.s32.totalorder %s143_s29, %s646_s6  ;;  %p649_p1 = scmp.lt.s32.totalorder %s647_s7, %s640_s4 }
  0x17   : > { %p644_p13 = pneg %p643_p12 }
  0x18   : > { %p650_p2 = por %p649_p1, %p648_p0 }
  0x1a   : > { %p651_p3 = pnand %p650_p2, %p644_p13 }
  0x1c   : > { %654 = shalt.err (!%p651_p3)
}
  0x1d   : > { %s740_s8 = smov 32   ;;  %s741_s9 = smov 2  }
  0x1e   : > { %561 = dma.hbm_to_vmem [thread:$0]  (!%p820_p9), %s141_s27, 128, %s143_s29, %s131_s3, %s740_s8, %s740_s8, %s741_s9  }
  0x1f   : > { %p547_p4 = scmp.ge.s32.totalorder %s737_s14, 1  ;;  %p169_p5 = scmp.lt.s32.totalorder %s737_s14, 3 }
  0x20   : > { %s545_s15 = sshll.u32 %s811_s22, 1  ;;  %s546_s18 = sshll.u32 %s733_s13, 5 }
  0x21   : > { %p835_p6 = pnand %p547_p4, %p169_p5  ;;  %s156_s19 = scalar_lea.vmem [#allocation7], %s545_s15 }
  0x22   : > { %s164_s23 = sshll.u32 %s156_s19, 4  ;;  %s162_s26 = scalar_lea.hbm %s951_s1, %s546_s18  ;;  %s165_s23 = int_to_ptr.vmem [resolvable:$true] %s164_s23 }
  0x23   : > { %s153_s28 = scalar_lea.sflag [#allocation8], %s811_s22  ;;  %s668_s4 = scalar_lea.vmem %s165_s23, 32 }
  0x24   : > { %p669_p8 = scmp.ne.s32.totalorder %s165_s23, %s668_s4  ;;  %s742_s27 = smov [#allocation7]  }
  0x25   : > { %s673_s29 = sshll.u32 %s742_s27, 4  ;;  %s674_s29 = int_to_ptr.vmem [resolvable:$false] %s673_s29 }
  0x26   : > { %p671_p11 = pnand %p669_p8, %p629_p10  ;;  %s675_s3 = scalar_lea.vmem %s674_s29, 64 }
  0x27   : > { %p676_p13 = scmp.lt.s32.totalorder %s165_s23, %s674_s29  ;;  %p677_p0 = scmp.lt.s32.totalorder %s675_s3, %s668_s4 }
  0x28   : > { %p672_p12 = pneg %p671_p11 }
  0x29   : > { %p678_p1 = por %p677_p0, %p676_p13 }
  0x2b   : > { %p679_p2 = pnand %p678_p1, %p672_p12 }
  0x2d   : > { %682 = shalt.err (!%p679_p2)
}
  0x2e   : > { %564 = dma.hbm_to_vmem [thread:$0]  (!%p820_p9), %s162_s26, 32, %s165_s23, %s153_s28  }
  0x2f   : > { %173 = sbr.rel (%p835_p6) target bundleno = 282 (0x11a), region = 28  ;;  %s175_s22 = sand.u32 (!%p835_p6), 1, %s721_s10  }
  0x30   : > { %s548_s5 = sshll.u32 (!%p835_p6), %s175_s22, 3  ;;  %s176_s6 = scalar_lea.sflag (!%p835_p6), [#allocation6], %s175_s22 }
  0x31   : > { %s179_s7 = scalar_lea.vmem (!%p835_p6), [#allocation5], %s548_s5 }
  0x34   : > { %708 = dma.done.wait (%p802_p7), %s176_s6, 128  }
  0x35   : > { %710 = vsyncadd (%p802_p7), %s176_s6, 4294967168  ;;  %s549_s8 = sshll.u32 %s175_s22, 1  ;;  %s185_s9 = scalar_lea.sflag [#allocation8], %s175_s22 }
  0x36   : > { %s188_s15 = scalar_lea.vmem [#allocation7], %s549_s8 }
  0x37   : > { %712 = dma.done.wait (%p802_p7), %s185_s9, 32  }
  0x38   : > { %714 = vsyncadd (%p802_p7), %s185_s9, 4294967264  ;;  %v261_v0 = vlaneseq  ;;  %v743_v1 = vmov 0.0   ;;  %vm229_vm0 = vcmask 1041408   ;;  %v224_v6 = vld [vmem:[%s179_s7] sm:$0x3]  ;;  %vm326_vm10 = vcmask 1041409  }
  0x39   : > { %221 = vst [vmem:[#allocation2] sm:$0xf] %v743_v1  ;;  %222 = vst [vmem:[#allocation3] sm:$0xf] %v743_v1  ;;  %v225_v7 = vld [vmem:[%s179_s7 + $0x2] sm:$0x3] }
  0x3a   : > { %223 = vst [vmem:[#allocation4] sm:$0xf] %v743_v1  ;;  %v262_v2 = vshrl.u32 %v261_v0, 7  ;;  %v264_v3 = vand.u32 127, %v261_v0  ;;  %v226_v8 = vld [vmem:[%s179_s7 + $0x4] sm:$0x3] }
  0x3b   : > { %v227_v9 = vld [vmem:[%s179_s7 + $0x6] sm:$0x3]  ;;  %v228_v10 = vld [vmem:[%s188_s15] sm:$0x3]  ;;  %v230_v11 = vsel %vm229_vm0, %v224_v6, -inf  ;;  %v231_v12 = vsel %vm229_vm0, %v225_v7, -inf }
  0x3c   : > { %v268_v4 = vmul.u32 128, %v262_v2  ;;  %v232_v13 = vsel %vm229_vm0, %v226_v8, -inf  ;;  %v233_v14 = vsel %vm229_vm0, %v227_v9, -inf  ;;  %v234_v15 = vmax.f32 %v230_v11, %v231_v12  ;;  %p213_p7 = scmp.lt.s32.totalorder %s729_s12, 1 }
  0x3d   : > { %v235_v16 = vmax.f32 %v232_v13, %v233_v14  ;;  %vm271_vm2 = vcmp.eq.s32.totalorder %v228_v10, 0  ;;  %vm272_vm3 = vcmp.eq.s32.totalorder %v228_v10, 1  ;;  %vm273_vm4 = vcmp.eq.s32.totalorder %v228_v10, 2 }
  0x3e   : > { %v860_v5 = vadd.s32 %v268_v4, %v264_v3  ;;  %vm274_vm5 = vcmp.eq.s32.totalorder %v228_v10, 3  ;;  %vm328_vm11 = vcmask 1042434   ;;  %vm330_vm12 = vcmask 1043459   ;;  %s965_s12 = smov (!%p213_p7, %s729_s12), 1 }
  0x3f   : > { %v236_v17 = vmax.f32 %v234_v15, %v235_v16  ;;  %vm421_vm13 = vcmask 1043456   ;;  %s550_s20 = sshll.u32 %s965_s12, 2  ;;  %vm425_vm14 = vcmask 3072   ;;  %vm431_vm15 = vcmask 11272  }
  0x40   : > { %vm270_vm1 = vcmp.lt.s32.totalorder %v860_v5, 256  ;;  %s216_s18 = scalar_lea.vmem %s952_s2, %s550_s20 }
  0x41   : > { %vm277_vm6 = vmand %vm271_vm2, %vm270_vm1  ;;  %v237_v21 = vsub.f32 %v224_v6, %v236_v17  ;;  %v238_v22 = vsub.f32 %v225_v7, %v236_v17  ;;  %v239_v23 = vsub.f32 %v226_v8, %v236_v17  ;;  %v240_v24 = vsub.f32 %v227_v9, %v236_v17  ;;  %v378_v57 = vld [vmem:[#allocation4] sm:$0xf] }
  0x42   : > { %vm278_vm7 = vmand %vm272_vm3, %vm270_vm1  ;;  %v871_v18 = vsel %vm277_vm6, 1.0, %v743_v1 }
  0x43   : > { %vm279_vm8 = vmand %vm273_vm4, %vm270_vm1  ;;  %v875_v19 = vsel %vm278_vm7, 1.0, %v743_v1  ;;  %v379_v20 = vsel %vm229_vm0, %v871_v18, 0.0  ;;  %v241_v29 = vmul.f32 1.442695, %v237_v21  ;;  %v243_v30 = vmul.f32 1.442695, %v238_v22 }
  0x44   : > { %vm280_vm9 = vmand %vm274_vm5, %vm270_vm1  ;;  %v881_v25 = vsel %vm279_vm8, 1.0, %v743_v1  ;;  %v380_v27 = vrot.slane %v379_v20, 4  ;;  %v386_v28 = vsel %vm229_vm0, %v875_v19, 0.0  ;;  %v245_v31 = vmul.f32 1.442695, %v239_v23 }
  0x45   : > { %v883_v26 = vsel %vm280_vm9, 1.0, %v743_v1  ;;  %v247_v32 = vmul.f32 1.442695, %v240_v24  ;;  %v387_v34 = vrot.slane %v386_v28, 4  ;;  %v393_v35 = vsel %vm229_vm0, %v881_v25, 0.0 }
  0x46   : > { %v381_v33 = vadd.f32 %v380_v27, %v379_v20  ;;  %617 = vpow2.f32 %v241_v29  ;;  %v394_v36 = vrot.slane %v393_v35, 4  ;;  %v400_v37 = vsel %vm229_vm0, %v883_v26, 0.0 }
  0x47   : > { %619 = vpow2.f32 %v243_v30  ;;  %v388_v39 = vadd.f32 %v387_v34, %v386_v28  ;;  %v401_v40 = vrot.slane %v400_v37, 4 }
  0x48   : > { %v382_v38 = vrot.slane %v381_v33, 2  ;;  %621 = vpow2.f32 %v245_v31  ;;  %v395_v41 = vadd.f32 %v394_v36, %v393_v35 }
  0x49   : > { %623 = vpow2.f32 %v247_v32  ;;  %v389_v43 = vrot.slane %v388_v39, 2  ;;  %v402_v44 = vadd.f32 %v401_v40, %v400_v37 }
  0x4a   : > { %v383_v42 = vadd.f32 %v382_v38, %v381_v33  ;;  %v396_v45 = vrot.slane %v395_v41, 2 }
  0x4b   : > { %v390_v47 = vadd.f32 %v389_v43, %v388_v39  ;;  %v403_v48 = vrot.slane %v402_v44, 2 }
  0x4c   : > { %v384_v46 = vrot.slane %v383_v42, 1  ;;  %v397_v49 = vadd.f32 %v396_v45, %v395_v41 }
  0x4d   : > { %v391_v51 = vrot.slane %v390_v47, 1  ;;  %v404_v52 = vadd.f32 %v403_v48, %v402_v44 }
  0x4e   : > { %v385_v50 = vadd.f32 %v384_v46, %v383_v42  ;;  %v398_v53 = vrot.slane %v397_v49, 1 }
  0x4f   : > { %v392_v54 = vadd.f32 %v391_v51, %v390_v47  ;;  %v405_v55 = vrot.slane %v404_v52, 1 }
  0x50   : > { %v399_v56 = vadd.f32 %v398_v53, %v397_v49 }
  0x51   : > { %v406_v58 = vadd.f32 %v405_v55, %v404_v52  ;;  %v411_v59 = vsel %vm326_vm10, %v392_v54, %v385_v50 }
  0x52   : > { %v412_v60 = vsel %vm328_vm11, %v399_v56, %v411_v59 }
  0x53   : > { %v618_v61 = vpop.eup %617  ;;  %v413_v62 = vsel %vm330_vm12, %v406_v58, %v412_v60 }
  0x54   : > { %v620_v63 = vpop.eup %619  ;;  %v249_v0 = vsel %vm229_vm0, %v618_v61, 0.0  ;;  %v415_v1 = vadd.f32 %v413_v62, %v378_v57 }
  0x55   : > { %v622_v2 = vpop.eup %621  ;;  %v250_v3 = vsel %vm229_vm0, %v620_v63, 0.0 }
  0x56   : > { %v624_v4 = vpop.eup %623  ;;  %v251_v6 = vadd.f32 %v250_v3, %v249_v0  ;;  %v252_v7 = vsel %vm229_vm0, %v622_v2, 0.0  ;;  %416 = vst [vmem:[#allocation4] sm:$0xf] %v415_v1 }
  0x57   : > { %v254_v8 = vsel %vm229_vm0, %v624_v4, 0.0 }
  0x58   : > { %v253_v9 = vadd.f32 %v252_v7, %v251_v6 }
  0x5a   : > { %v255_v10 = vadd.f32 %v254_v8, %v253_v9 }
  0x5c   : > { %625 = vrcp.f32 %v255_v10 }
  0x5d   : > { %v433_v11 = vld [vmem:[#allocation4] sm:$0xf] }
  0x5e   : > { %v434_v12 = vsel %vm421_vm13, %v433_v11, 0.0 }
  0x5f   : > { %435 = vadd.xlane.f32.xlu1 %v434_v12 }
  0x69   : > { %v626_v13 = vpop.eup %625 }
  0x6a   : > { %v257_v14 = vmul.f32 %v626_v13, %v618_v61  ;;  %v258_v15 = vmul.f32 %v626_v13, %v620_v63  ;;  %v259_v16 = vmul.f32 %v626_v13, %v622_v2  ;;  %v260_v17 = vmul.f32 %v626_v13, %v624_v4 }
  0x6c   : > { %v285_v20 = vsel %vm270_vm1, %v257_v14, 0.0  ;;  %v286_v21 = vsel %vm270_vm1, %v258_v15, 0.0  ;;  %v287_v22 = vsel %vm270_vm1, %v259_v16, 0.0  ;;  %v288_v23 = vsel %vm270_vm1, %v260_v17, 0.0 }
  0x6d   : > { %v290_v24 = vmul.f32 %v285_v20, %v871_v18  ;;  %v291_v27 = vmul.f32 %v286_v21, %v875_v19  ;;  %v292_v28 = vmul.f32 %v287_v22, %v881_v25  ;;  %v293_v29 = vmul.f32 %v288_v23, %v883_v26 }
  0x6e   : > { %v336_v30 = vmul.f32 %v285_v20, %v285_v20  ;;  %v337_v31 = vmul.f32 %v286_v21, %v286_v21  ;;  %v338_v32 = vmul.f32 %v287_v22, %v287_v22  ;;  %v339_v33 = vmul.f32 %v288_v23, %v288_v23  ;;  %v289_v20 = vld [vmem:[#allocation2] sm:$0xf] }
  0x6f   : > { %v294_v34 = vsel %vm229_vm0, %v290_v24, 0.0  ;;  %v301_v35 = vsel %vm229_vm0, %v291_v27, 0.0  ;;  %v308_v36 = vsel %vm229_vm0, %v292_v28, 0.0  ;;  %v315_v5 = vsel %vm229_vm0, %v293_v29, 0.0 }
  0x70   : > { %v295_v37 = vrot.slane %v294_v34, 4  ;;  %v302_v18 = vrot.slane %v301_v35, 4  ;;  %v309_v38 = vrot.slane %v308_v36, 4  ;;  %v316_v19 = vrot.slane %v315_v5, 4 }
  0x71   : > { %v340_v25 = vsel %vm229_vm0, %v336_v30, 0.0  ;;  %v347_v26 = vsel %vm229_vm0, %v337_v31, 0.0  ;;  %v354_v39 = vsel %vm229_vm0, %v338_v32, 0.0  ;;  %v361_v40 = vsel %vm229_vm0, %v339_v33, 0.0  ;;  %v335_v31 = vld [vmem:[#allocation3] sm:$0xf] }
  0x72   : > { %v296_v41 = vadd.f32 %v295_v37, %v294_v34  ;;  %v303_v42 = vadd.f32 %v302_v18, %v301_v35  ;;  %v310_v43 = vadd.f32 %v309_v38, %v308_v36  ;;  %v317_v44 = vadd.f32 %v316_v19, %v315_v5 }
  0x73   : > { %v341_v45 = vrot.slane %v340_v25, 4  ;;  %v348_v46 = vrot.slane %v347_v26, 4  ;;  %v355_v47 = vrot.slane %v354_v39, 4  ;;  %v362_v48 = vrot.slane %v361_v40, 4 }
  0x74   : > { %v297_v49 = vrot.slane %v296_v41, 2  ;;  %v304_v50 = vrot.slane %v303_v42, 2  ;;  %v311_v51 = vrot.slane %v310_v43, 2  ;;  %v318_v52 = vrot.slane %v317_v44, 2 }
  0x75   : > { %v342_v53 = vadd.f32 %v341_v45, %v340_v25  ;;  %v349_v54 = vadd.f32 %v348_v46, %v347_v26  ;;  %v356_v55 = vadd.f32 %v355_v47, %v354_v39  ;;  %v363_v56 = vadd.f32 %v362_v48, %v361_v40 }
  0x76   : > { %v298_v57 = vadd.f32 %v297_v49, %v296_v41  ;;  %v305_v58 = vadd.f32 %v304_v50, %v303_v42  ;;  %v312_v59 = vadd.f32 %v311_v51, %v310_v43  ;;  %v319_v60 = vadd.f32 %v318_v52, %v317_v44 }
  0x77   : > { %v343_v61 = vrot.slane %v342_v53, 2  ;;  %v350_v62 = vrot.slane %v349_v54, 2  ;;  %v357_v63 = vrot.slane %v356_v55, 2  ;;  %v364_v0 = vrot.slane %v363_v56, 2 }
  0x78   : > { %v299_v1 = vrot.slane %v298_v57, 1  ;;  %v306_v2 = vrot.slane %v305_v58, 1  ;;  %v313_v3 = vrot.slane %v312_v59, 1  ;;  %v320_v4 = vrot.slane %v319_v60, 1 }
  0x79   : > { %v344_v6 = vadd.f32 %v343_v61, %v342_v53  ;;  %v351_v7 = vadd.f32 %v350_v62, %v349_v54  ;;  %v358_v8 = vadd.f32 %v357_v63, %v356_v55  ;;  %v365_v9 = vadd.f32 %v364_v0, %v363_v56 }
  0x7a   : > { %v300_v10 = vadd.f32 %v299_v1, %v298_v57  ;;  %v307_v11 = vadd.f32 %v306_v2, %v305_v58  ;;  %v314_v12 = vadd.f32 %v313_v3, %v312_v59  ;;  %v321_v13 = vadd.f32 %v320_v4, %v319_v60 }
  0x7b   : > { %v345_v14 = vrot.slane %v344_v6, 1  ;;  %v352_v15 = vrot.slane %v351_v7, 1  ;;  %v359_v16 = vrot.slane %v358_v8, 1  ;;  %v366_v17 = vrot.slane %v365_v9, 1 }
  0x7c   : > { %v327_v21 = vsel %vm326_vm10, %v307_v11, %v300_v10  ;;  %vm437_vm0 = vcmask 19472  }
  0x7d   : > { %v329_v22 = vsel %vm328_vm11, %v314_v12, %v327_v21  ;;  %v346_v23 = vadd.f32 %v345_v14, %v344_v6  ;;  %v353_v24 = vadd.f32 %v352_v15, %v351_v7  ;;  %v360_v27 = vadd.f32 %v359_v16, %v358_v8 }
  0x7e   : > { %v331_v28 = vsel %vm330_vm12, %v321_v13, %v329_v22  ;;  %v367_v29 = vadd.f32 %v366_v17, %v365_v9 }
  0x7f   : > { %v333_v30 = vadd.f32 %v331_v28, %v289_v20  ;;  %v372_v32 = vsel %vm326_vm10, %v353_v24, %v346_v23 }
  0x80   : > { %v373_v33 = vsel %vm328_vm11, %v360_v27, %v372_v32 }
  0x81   : > { %334 = vst [vmem:[#allocation2] sm:$0xf] %v333_v30  ;;  %v374_v34 = vsel %vm330_vm12, %v367_v29, %v373_v33 }
  0x82   : > { %v376_v35 = vadd.f32 %v374_v34, %v335_v31 }
  0x84   : > { %377 = vst [vmem:[#allocation3] sm:$0xf] %v376_v35 }
  0x88   : > { %v420_v36 = vld [vmem:[#allocation2] sm:$0xf] }
  0x89   : > { %v422_v5 = vsel %vm421_vm13, %v420_v36, 0.0 }
  0x8a   : > { %423 = vadd.xlane.f32.xlu0 %v422_v5 }
  0x8b   : > { %v427_v37 = vld [vmem:[#allocation3] sm:$0xf] }
  0x8c   : > { %v428_v18 = vsel %vm421_vm13, %v427_v37, 0.0 }
  0x8e   : > { %429 = vadd.xlane.f32.xlu0 %v428_v18 }
  0xe8   : > { %v436_v19 = vpop.xlane.xlu1 %435 }
 0x113   : > { %v424_v38 = vpop.xlane.xlu0 %423 }
 0x114   : > { %426 = vst.msk [vmem:[%s216_s18] sm:$0xf] %vm425_vm14, %v424_v38 }
 0x117   : > { %v430_v25 = vpop.xlane.xlu0 %429 }
 0x118   : > { %432 = vst.msk [vmem:[%s216_s18] sm:$0xf] %vm431_vm15, %v430_v25 }
 0x119   : > { %438 = vst.msk [vmem:[%s216_s18] sm:$0xf] %vm437_vm0, %v436_v19 }
 0x11a PF: > { %s18_s14 = sadd.s32 1, %s737_s14   ;;  %s957_s9 = smov %s721_s10 }
 0x11b   : > { %p15_p9 = scmp.ge.s32.totalorder %s18_s14, 4   ;;  %s958_s10 = smov %s725_s11 }
 0x11c   : > { %s959_s11 = smov %s808_s21  ;;  %s960_s12 = smov %s733_s13 }
 0x11d   : > { %s961_s13 = smov %s963_s16  ;;  %17 = sbr.rel (!%p15_p9) target bundleno = 6 (0x6), region = 89 }
 0x122   :  { %458 = vsyncpa [#allocation6], 1 }
 0x123   :  { %460 = vsyncpa [#allocation6 + $0x1], 1 }
 0x124   :  { %461 = vsyncpa [#allocation8], 1 }
 0x125   :  { %463 = vsyncpa [#allocation8 + $0x1], 1 }

</bundles_post_ra>
